<compile_context>
chip_gen: v5e
topology: v5e:2x2
jax: 0.10.0
libtpu: 0.0.40
codegen_flags: <defaults>
</compile_context>

<pallas_src>
import jax
import jax.numpy as jnp
from jax.experimental import pallas as pl
from jax.experimental.pallas import tpu as pltpu

_INV_SQRT2 = 0.7071067811865476


def _conv1x1_erf_kernel(x_ref, w_ref, b_ref, o_ref):
    # x_ref: (N, T)      f32 VMEM      (T = lane-dense spatial tile)
    # w_ref: (Cout,)     f32 SMEM      (per-channel conv weight, Cin == 1)
    # b_ref: (Cout,)     f32 SMEM      (per-channel bias)
    # o_ref: (N*Cout, T) f32 VMEM      row n*Cout + c = channel c of batch n
    n_rows = x_ref.shape[0]
    cout = w_ref.shape[0]
    x = x_ref[...]                                   # (N, T)
    for c in range(cout):                            # static unroll (Cout tiny)
        w_c = w_ref[c]                               # SMEM scalar read
        b_c = b_ref[c]
        # 1x1 conv (Cin=1) == scale+bias; then erf(v/sqrt(2)) + 1 (VPU + EUP)
        y = jax.lax.erf((x * w_c + b_c) * _INV_SQRT2) + 1.0   # (N, T)
        for n in range(n_rows):                      # static unroll
            o_ref[n * cout + c, :] = y[n, :]


def conv1x1_erf(x_nchw, weight, bias, *, lane_tile=2048):
    """Fused Conv2d(1, Cout, kernel=1) + erf(v/sqrt(2)) + 1.

    x_nchw: (N, 1, H, W); weight: (Cout, 1, 1, 1); bias: (Cout,)
    returns: (N, Cout, H, W)
    """
    N, Cin, H, W = x_nchw.shape
    if Cin != 1:
        raise NotImplementedError("kernel is specialized for Cin == 1")
    Cout = weight.shape[0]
    HW = H * W

    # NCHW with Cin=1 -> (N, H*W): a pure reshape, no transpose.
    x_rows = x_nchw.reshape(N, HW).astype(jnp.float32)
    w_vec = weight.reshape(Cout).astype(jnp.float32)
    b_vec = bias.reshape(Cout).astype(jnp.float32)

    # One full-array block for small images; lane-dense tiles for big ones
    # (keeps tile bytes small enough for v7x's 64 MiB VMEM as well).
    T = HW if HW <= lane_tile else lane_tile
    num_tiles = pl.cdiv(HW, T)

    out_rows = pl.pallas_call(
        _conv1x1_erf_kernel,
        out_shape=jax.ShapeDtypeStruct((N * Cout, HW), jnp.float32),
        grid_spec=pltpu.PrefetchScalarGridSpec(
            num_scalar_prefetch=0,
            grid=(num_tiles,),
            in_specs=[
                pl.BlockSpec((N, T), lambda j: (0, j)),
                pl.BlockSpec(memory_space=pltpu.MemorySpace.SMEM),
                pl.BlockSpec(memory_space=pltpu.MemorySpace.SMEM),
            ],
            out_specs=pl.BlockSpec((N * Cout, T), lambda j: (0, j)),
        ),
        compiler_params=pltpu.CompilerParams(
            dimension_semantics=("parallel",)),
    )(x_rows, w_vec, b_vec)

    # (N*Cout, H*W) -> NCHW: rows are n-major / c-minor, so this is a reshape.
    return out_rows.reshape(N, Cout, H, W)


if __name__ == "__main__":
    key = jax.random.PRNGKey(0)
    k_x, k_w, k_b = jax.random.split(key, 3)

    # Shapes from the PyTorch module: x1 = randn(1, 1, 40, 40), Conv2d(1, 3, 1)
    N, Cin, H, W, Cout = 1, 1, 40, 40, 3
    x1 = jax.random.normal(k_x, (N, Cin, H, W), dtype=jnp.float32)

    # Deterministic conv parameters (Conv2d(1, 3, 1) shapes)
    fan_in = Cin * 1 * 1
    bound = 1.0 / (fan_in ** 0.5)
    weight = jax.random.uniform(k_w, (Cout, Cin, 1, 1), jnp.float32, -bound, bound)
    bias = jax.random.uniform(k_b, (Cout,), jnp.float32, -bound, bound)

    out = conv1x1_erf(x1, weight, bias)
    jax.block_until_ready(out)

    # Reference in plain JAX (Cin == 1 -> conv is per-channel scale + bias).
    v1_ref = x1 * weight.reshape(1, Cout, 1, 1) + bias.reshape(1, Cout, 1, 1)
    ref = jax.lax.erf(v1_ref * _INV_SQRT2) + 1.0
    assert out.shape == (N, Cout, H, W)
    assert jnp.allclose(out, ref, atol=1e-5, rtol=1e-5)

    print("KERNEL_OK")
</pallas_src>

<mosaic_0001>
module attributes {stable_mosaic.version = 11 : i64} {
  func.func @_conv1x1_erf_kernel(%arg0: i32, %arg1: memref<1x1600xf32, #tpu.memory_space<vmem>>, %arg2: memref<3xf32, #tpu.memory_space<smem>>, %arg3: memref<3xf32, #tpu.memory_space<smem>>, %arg4: memref<3x1600xf32, #tpu.memory_space<vmem>>) attributes {dimension_semantics = [#tpu.dimension_semantics<parallel>], iteration_bounds = array<i64: 1>, scalar_prefetch = 0 : i64, scratch_operands = 0 : i64, tpu.core_type = #tpu.core_type<tc>, window_params = [{transform_indices = @transform_0, window_bounds = array<i64: 1, 1600>}, {transform_indices = @transform_1, window_bounds = array<i64: 3>}, {transform_indices = @transform_2, window_bounds = array<i64: 3>}, {transform_indices = @transform_3, window_bounds = array<i64: 3, 1600>}]} {
    %c0 = arith.constant 0 : index
    %c0_0 = arith.constant 0 : index
    %0 = vector.load %arg1[%c0, %c0_0] : memref<1x1600xf32, #tpu.memory_space<vmem>>, vector<1x1600xf32>
    %c0_1 = arith.constant 0 : index
    %1 = memref.load %arg2[%c0_1] : memref<3xf32, #tpu.memory_space<smem>>
    %c0_2 = arith.constant 0 : index
    %2 = memref.load %arg3[%c0_2] : memref<3xf32, #tpu.memory_space<smem>>
    %3 = vector.broadcast %1 : f32 to vector<1x1600xf32>
    %4 = arith.mulf %0, %3 : vector<1x1600xf32>
    %5 = vector.broadcast %2 : f32 to vector<1x1600xf32>
    %6 = arith.addf %4, %5 : vector<1x1600xf32>
    %cst = arith.constant 0.707106769 : f32
    %7 = vector.broadcast %cst : f32 to vector<1x1600xf32>
    %8 = arith.mulf %6, %7 : vector<1x1600xf32>
    %9 = math.erf %8 : vector<1x1600xf32>
    %cst_3 = arith.constant 1.000000e+00 : f32
    %10 = vector.broadcast %cst_3 : f32 to vector<1x1600xf32>
    %11 = arith.addf %9, %10 : vector<1x1600xf32>
    %12 = vector.shape_cast %11 : vector<1x1600xf32> to vector<1600xf32>
    %c0_4 = arith.constant 0 : index
    %c0_5 = arith.constant 0 : index
    %13 = vector.load %arg4[%c0_4, %c0_5] : memref<3x1600xf32, #tpu.memory_space<vmem>>, vector<1x1600xf32>
    %14 = vector.shape_cast %13 : vector<1x1600xf32> to vector<1600xf32>
    %15 = vector.shape_cast %12 : vector<1600xf32> to vector<1x1600xf32>
    tpu.vector_store %arg4[%c0_4, %c0_5], %15 {strides = array<i32>} : memref<3x1600xf32, #tpu.memory_space<vmem>>, vector<1x1600xf32>,
    %c1 = arith.constant 1 : index
    %16 = memref.load %arg2[%c1] : memref<3xf32, #tpu.memory_space<smem>>
    %c1_6 = arith.constant 1 : index
    %17 = memref.load %arg3[%c1_6] : memref<3xf32, #tpu.memory_space<smem>>
    %18 = vector.broadcast %16 : f32 to vector<1x1600xf32>
    %19 = arith.mulf %0, %18 : vector<1x1600xf32>
    %20 = vector.broadcast %17 : f32 to vector<1x1600xf32>
    %21 = arith.addf %19, %20 : vector<1x1600xf32>
    %cst_7 = arith.constant 0.707106769 : f32
    %22 = vector.broadcast %cst_7 : f32 to vector<1x1600xf32>
    %23 = arith.mulf %21, %22 : vector<1x1600xf32>
    %24 = math.erf %23 : vector<1x1600xf32>
    %cst_8 = arith.constant 1.000000e+00 : f32
    %25 = vector.broadcast %cst_8 : f32 to vector<1x1600xf32>
    %26 = arith.addf %24, %25 : vector<1x1600xf32>
    %27 = vector.shape_cast %26 : vector<1x1600xf32> to vector<1600xf32>
    %c1_9 = arith.constant 1 : index
    %c0_10 = arith.constant 0 : index
    %28 = vector.load %arg4[%c1_9, %c0_10] : memref<3x1600xf32, #tpu.memory_space<vmem>>, vector<1x1600xf32>
    %29 = vector.shape_cast %28 : vector<1x1600xf32> to vector<1600xf32>
    %30 = vector.shape_cast %27 : vector<1600xf32> to vector<1x1600xf32>
    tpu.vector_store %arg4[%c1_9, %c0_10], %30 {strides = array<i32>} : memref<3x1600xf32, #tpu.memory_space<vmem>>, vector<1x1600xf32>,
    %c2 = arith.constant 2 : index
    %31 = memref.load %arg2[%c2] : memref<3xf32, #tpu.memory_space<smem>>
    %c2_11 = arith.constant 2 : index
    %32 = memref.load %arg3[%c2_11] : memref<3xf32, #tpu.memory_space<smem>>
    %33 = vector.broadcast %31 : f32 to vector<1x1600xf32>
    %34 = arith.mulf %0, %33 : vector<1x1600xf32>
    %35 = vector.broadcast %32 : f32 to vector<1x1600xf32>
    %36 = arith.addf %34, %35 : vector<1x1600xf32>
    %cst_12 = arith.constant 0.707106769 : f32
    %37 = vector.broadcast %cst_12 : f32 to vector<1x1600xf32>
    %38 = arith.mulf %36, %37 : vector<1x1600xf32>
    %39 = math.erf %38 : vector<1x1600xf32>
    %cst_13 = arith.constant 1.000000e+00 : f32
    %40 = vector.broadcast %cst_13 : f32 to vector<1x1600xf32>
    %41 = arith.addf %39, %40 : vector<1x1600xf32>
    %42 = vector.shape_cast %41 : vector<1x1600xf32> to vector<1600xf32>
    %c2_14 = arith.constant 2 : index
    %c0_15 = arith.constant 0 : index
    %43 = vector.load %arg4[%c2_14, %c0_15] : memref<3x1600xf32, #tpu.memory_space<vmem>>, vector<1x1600xf32>
    %44 = vector.shape_cast %43 : vector<1x1600xf32> to vector<1600xf32>
    %45 = vector.shape_cast %42 : vector<1600xf32> to vector<1x1600xf32>
    tpu.vector_store %arg4[%c2_14, %c0_15], %45 {strides = array<i32>} : memref<3x1600xf32, #tpu.memory_space<vmem>>, vector<1x1600xf32>,
    return
  }
  func.func @transform_0(%arg0: i32) -> (i32, i32) {
    %c0_i32 = arith.constant 0 : i32
    %c0_i32_0 = arith.constant 0 : i32
    return %c0_i32, %arg0 : i32, i32
  }
  func.func @transform_1(%arg0: i32) -> i32 {
    %c0_i32 = arith.constant 0 : i32
    %c0_i32_0 = arith.constant 0 : i32
    return %c0_i32 : i32
  }
  func.func @transform_2(%arg0: i32) -> i32 {
    %c0_i32 = arith.constant 0 : i32
    %c0_i32_0 = arith.constant 0 : i32
    return %c0_i32 : i32
  }
  func.func @transform_3(%arg0: i32) -> (i32, i32) {
    %c0_i32 = arith.constant 0 : i32
    %c0_i32_0 = arith.constant 0 : i32
    return %c0_i32, %arg0 : i32, i32
  }
}

</mosaic_0001>

<bundles_post_ra>
// kernel: tpu_custom_call.1
= control target key start
LH: loop header
LB: loop body
LE: loop exit
PB: predicated region body
PF: predicated region fallthrough
CT: control target
= control target key end

     0   :  { %8 = vsyncpa [#allocation3], 0  ;;  %s683_s0 = inlined_call_operand.hbm [shape: f32[1,1600], index: 0, kind: input, shape index: {}]   ;;  %s684_s1 = inlined_call_operand.hbm [shape: f32[3], index: 1, kind: input, shape index: {}]   ;;  %s685_s2 = inlined_call_operand.vmem [shape: f32[3], index: 2, kind: input, shape index: {}]   ;;  %s686_s3 = inlined_call_operand.hbm [shape: f32[3,1600], index: 3, kind: output, shape index: {}]  }
   0x1   :  { %9 = vsyncpa [#allocation5], 0 }
   0x2   :  { %10 = vsyncpa [#allocation6], 0 }
   0x3   :  { %11 = vsyncpa [#allocation4], 0  ;;  %s17_s14 = sshll.u32 %s683_s0, 4  ;;  %s472_s15 = smov [#allocation2]   ;;  %s18_s14 = int_to_ptr.hbm [resolvable:$true] %s17_s14 }
   0x4   :  { %s19_s16 = sshll.u32 %s472_s15, 4  ;;  %s28_s19 = sshll.u32 %s684_s1, 4  ;;  %s20_s16 = int_to_ptr.vmem [resolvable:$true] %s19_s16  ;;  %s29_s19 = int_to_ptr.hbm [resolvable:$true] %s28_s19 }
   0x5   :  { %22 = dma.hbm_to_vmem [thread:$0]  %s18_s14, 208, %s20_s16, [#allocation3]  }
   0x6   :  { %s473_s20 = smov [#allocation7]   ;;  %s37_s23 = sshll.u32 %s685_s2, 4  ;;  %s38_s23 = int_to_ptr.vmem [resolvable:$true] %s37_s23 }
   0x7   :  { %31 = dma.hbm_to_smem %s29_s19, 16, %s473_s20, [#allocation5]  }
   0x8   :  { %s474_s24 = smov [#allocation8]  }
   0x9   :  { %40 = dma.vmem_to_smem %s38_s23, 16, %s474_s24, [#allocation6]  }
   0xa   :  { %464 = dma.done.wait [#allocation3], 208  }
   0xb   :  { %465 = vsyncadd [#allocation3], 4294967088 }
   0xc   :  { %466 = dma.done.wait [#allocation5], 16  }
   0xd   :  { %467 = vsyncadd [#allocation5], 4294967280 }
   0xe   :  { %468 = dma.done.wait [#allocation6], 16  }
   0xf   :  { %469 = vsyncadd [#allocation6], 4294967280 }
  0x10   :  { %53 = sfence }
  0x11   :  { %s56_s0 = sld [smem:[#allocation7]]  ;;  %v54_v0 = vld [vmem:[#allocation2] sm:$0xff]  ;;  %v55_v1 = vld [vmem:[#allocation2 + $0x8] sm:$0x1f]  ;;  %s475_s28 = smov [#allocation9]  }
  0x12   :  { %s57_s1 = sld [smem:[#allocation8]]  ;;  %s352_s29 = sshll.u32 %s475_s28, 4  ;;  %s353_s29 = int_to_ptr.vmem [resolvable:$true] %s352_s29 }
  0x13   :  { %s368_s25 = sld [smem:[#allocation7 + $0x1]]  ;;  %s354_s5 = sshll.u32 %s686_s3, 4  ;;  %s355_s5 = int_to_ptr.hbm [resolvable:$true] %s354_s5 }
  0x14   :  { %s369_s26 = sld [smem:[#allocation8 + $0x1]] }
  0x15   :  { %s505_s2 = sld [smem:[#allocation7 + $0x2]] }
  0x16   :  { %s511_s27 = sld [smem:[#allocation8 + $0x2]] }
  0x17   :  { %v58_v2 = vstv %s56_s0 }
  0x18   :  { %v59_v3 = vmul.f32 %v58_v2, %v54_v0  ;;  %v61_v4 = vstv %s57_s1  ;;  %v60_v5 = vmul.f32 %v58_v2, %v55_v1 }
  0x19   :  { %v157_v6 = vstv %s368_s25 }
  0x1a   :  { %v62_v7 = vadd.f32 %v61_v4, %v59_v3  ;;  %v63_v8 = vadd.f32 %v61_v4, %v60_v5  ;;  %v158_v9 = vmul.f32 %v157_v6, %v54_v0  ;;  %v160_v10 = vstv %s369_s26 }
  0x1b   :  { %v159_v11 = vmul.f32 %v157_v6, %v55_v1  ;;  %v253_v23 = vstv %s505_s2 }
  0x1c   :  { %v507_v12 = vmul.f32 0.70710677, %v62_v7  ;;  %v509_v13 = vmul.f32 0.70710677, %v63_v8  ;;  %v161_v14 = vadd.f32 %v160_v10, %v158_v9  ;;  %v254_v31 = vmul.f32 %v253_v23, %v54_v0 }
  0x1d   :  { %v162_v15 = vadd.f32 %v160_v10, %v159_v11  ;;  %v256_v35 = vstv %s511_s27  ;;  %v255_v39 = vmul.f32 %v253_v23, %v55_v1 }
  0x1e   :  { %v66_v16 = vmul.f32 %v507_v12, %v507_v12  ;;  %v106_v17 = vmul.f32 %v509_v13, %v509_v13  ;;  %v517_v18 = vmul.f32 0.70710677, %v161_v14  ;;  %v257_v51 = vadd.f32 %v256_v35, %v254_v31 }
  0x1f   :  { %v519_v19 = vmul.f32 0.70710677, %v162_v15  ;;  %v258_v59 = vadd.f32 %v256_v35, %v255_v39 }
  0x20   :  { %v521_v20 = vmin.f32 %v66_v16, 16.0  ;;  %v523_v21 = vmin.f32 %v106_v17, 16.0  ;;  %v165_v22 = vmul.f32 %v517_v18, %v517_v18  ;;  %v556_v7 = vmul.f32 0.70710677, %v257_v51 }
  0x21   :  { %v205_v24 = vmul.f32 %v519_v19, %v519_v19  ;;  %v149_v51 = vlaneseq }
  0x22   :  { %v68_v25 = vmul.f32 2.1237322e-06, %v521_v20  ;;  %v79_v26 = vmul.f32 3.8918573e-05, %v521_v20  ;;  %v108_v27 = vmul.f32 2.1237322e-06, %v523_v21 }
  0x23   :  { %v119_v28 = vmul.f32 3.8918573e-05, %v523_v21  ;;  %v534_v29 = vmin.f32 %v165_v22, 16.0  ;;  %v536_v30 = vmin.f32 %v205_v24, 16.0  ;;  %vm625_vm9 = vcmp.lt.s32.totalorder %v149_v51, 576 }
  0x24   :  { %v69_v32 = vadd.f32 0.00028619796, %v68_v25  ;;  %v80_v33 = vadd.f32 0.001143296, %v79_v26  ;;  %v109_v34 = vadd.f32 0.00028619796, %v108_v27 }
  0x25   :  { %v120_v36 = vadd.f32 0.001143296, %v119_v28  ;;  %v167_v37 = vmul.f32 2.1237322e-06, %v534_v29  ;;  %v178_v38 = vmul.f32 3.8918573e-05, %v534_v29 }
  0x26   :  { %v70_v40 = vmul.f32 %v69_v32, %v521_v20  ;;  %v81_v41 = vmul.f32 %v80_v33, %v521_v20  ;;  %v110_v42 = vmul.f32 %v109_v34, %v523_v21  ;;  %v207_v43 = vmul.f32 2.1237322e-06, %v536_v30 }
  0x27   :  { %v121_v44 = vmul.f32 %v120_v36, %v523_v21  ;;  %v168_v45 = vadd.f32 0.00028619796, %v167_v37  ;;  %v179_v46 = vadd.f32 0.001143296, %v178_v38  ;;  %v218_v47 = vmul.f32 3.8918573e-05, %v536_v30 }
  0x28   :  { %v71_v48 = vadd.f32 0.0036580483, %v70_v40  ;;  %v82_v49 = vadd.f32 0.014752088, %v81_v41  ;;  %v111_v50 = vadd.f32 0.0036580483, %v110_v42 }
  0x29   :  { %v122_v52 = vadd.f32 0.014752088, %v121_v44  ;;  %v169_v53 = vmul.f32 %v168_v45, %v534_v29  ;;  %v180_v54 = vmul.f32 %v179_v46, %v534_v29  ;;  %v208_v55 = vadd.f32 0.00028619796, %v207_v43 }
  0x2a   :  { %v72_v56 = vmul.f32 %v71_v48, %v521_v20  ;;  %v83_v57 = vmul.f32 %v82_v49, %v521_v20  ;;  %v112_v58 = vmul.f32 %v111_v50, %v523_v21  ;;  %v219_v63 = vadd.f32 0.001143296, %v218_v47 }
  0x2b   :  { %v123_v60 = vmul.f32 %v122_v52, %v523_v21  ;;  %v170_v61 = vadd.f32 0.0036580483, %v169_v53  ;;  %v181_v62 = vadd.f32 0.014752088, %v180_v54  ;;  %v209_v3 = vmul.f32 %v208_v55, %v536_v30 }
  0x2c   :  { %v73_v0 = vadd.f32 0.05243302, %v72_v56  ;;  %v84_v1 = vadd.f32 0.112945676, %v83_v57  ;;  %v113_v2 = vadd.f32 0.05243302, %v112_v58  ;;  %v220_v17 = vmul.f32 %v219_v63, %v536_v30 }
  0x2d   :  { %v124_v4 = vadd.f32 0.112945676, %v123_v60  ;;  %v171_v5 = vmul.f32 %v170_v61, %v534_v29  ;;  %v182_v6 = vmul.f32 %v181_v62, %v534_v29  ;;  %v210_v11 = vadd.f32 0.0036580483, %v209_v3 }
  0x2e   :  { %v74_v8 = vmul.f32 %v73_v0, %v521_v20  ;;  %v85_v9 = vmul.f32 %v84_v1, %v521_v20  ;;  %v114_v10 = vmul.f32 %v113_v2, %v523_v21  ;;  %v221_v31 = vadd.f32 0.014752088, %v220_v17 }
  0x2f   :  { %v125_v14 = vmul.f32 %v124_v4, %v523_v21  ;;  %v172_v15 = vadd.f32 0.05243302, %v171_v5  ;;  %v183_v16 = vadd.f32 0.112945676, %v182_v6  ;;  %v211_v25 = vmul.f32 %v210_v11, %v536_v30 }
  0x30   :  { %v75_v22 = vadd.f32 0.18741608, %v74_v8  ;;  %v86_v23 = vadd.f32 0.4994258, %v85_v9  ;;  %v115_v24 = vadd.f32 0.18741608, %v114_v10  ;;  %v222_v39 = vmul.f32 %v221_v31, %v536_v30 }
  0x31   :  { %v126_v26 = vadd.f32 0.4994258, %v125_v14  ;;  %v173_v27 = vmul.f32 %v172_v15, %v534_v29  ;;  %v184_v28 = vmul.f32 %v183_v16, %v534_v29  ;;  %v212_v35 = vadd.f32 0.05243302, %v211_v25 }
  0x32   :  { %v76_v32 = vmul.f32 %v75_v22, %v521_v20  ;;  %v87_v33 = vmul.f32 %v86_v23, %v521_v20  ;;  %v116_v34 = vmul.f32 %v115_v24, %v523_v21  ;;  %v571_v41 = vmul.f32 0.70710677, %v258_v59 }
  0x33   :  { %v127_v36 = vmul.f32 %v126_v26, %v523_v21  ;;  %v174_v37 = vadd.f32 0.18741608, %v173_v27  ;;  %v185_v38 = vadd.f32 0.4994258, %v184_v28  ;;  %v223_v45 = vadd.f32 0.112945676, %v222_v39 }
  0x34   :  { %v88_v40 = vadd.f32 1.0, %v87_v33  ;;  %v77_v46 = vadd.f32 1.1283791, %v76_v32  ;;  %v117_v20 = vadd.f32 1.1283791, %v116_v34  ;;  %v261_v47 = vmul.f32 %v556_v7, %v556_v7 }
  0x35   :  { %v128_v42 = vadd.f32 1.0, %v127_v36  ;;  %v175_v43 = vmul.f32 %v174_v37, %v534_v29  ;;  %v186_v44 = vmul.f32 %v185_v38, %v534_v29  ;;  %v213_v49 = vmul.f32 %v212_v35, %v536_v30 }
  0x36   :  { %380 = vrcp.f32 %v88_v40  ;;  %v98_v21 = vand.u32 2147483647, %v88_v40  ;;  %v100_v48 = vand.u32 2147483648, %v88_v40  ;;  %v301_v52 = vmul.f32 %v571_v41, %v571_v41 }
  0x37   :  { %382 = vrcp.f32 %v128_v42  ;;  %v138_v50 = vand.u32 2147483647, %v128_v42  ;;  %v140_v53 = vand.u32 2147483648, %v128_v42  ;;  %v176_v54 = vadd.f32 1.1283791, %v175_v43 }
  0x38   :  { %v580_v29 = vadd.f32 1.0, %v186_v44  ;;  %v224_v55 = vmul.f32 %v223_v45, %v536_v30  ;;  %v78_v56 = vmul.f32 %v77_v46, %v507_v12  ;;  %vm94_vm0 = vweird.f32 %v88_v40 }
  0x39   :  { %v585_v57 = vmul.f32 %v117_v20, %v509_v13  ;;  %v587_v58 = vmin.f32 %v261_v47, 16.0  ;;  %vm589_vm1 = vcmp.eq.f32.partialorder %v98_v21, 8.507059e+37  ;;  %v101_v60 = vor.u32 1.1754944e-38, %v100_v48 }
  0x3a   :  { %384 = vrcp.f32 %v580_v29  ;;  %v214_v61 = vadd.f32 0.18741608, %v213_v49  ;;  %vm134_vm2 = vweird.f32 %v128_v42  ;;  %vm594_vm3 = vcmp.eq.f32.partialorder %v138_v50, 8.507059e+37 }
  0x3b   :  { %v225_v12 = vadd.f32 0.4994258, %v224_v55  ;;  %v263_v13 = vmul.f32 2.1237322e-06, %v587_v58  ;;  %v274_v0 = vmul.f32 3.8918573e-05, %v587_v58  ;;  %v601_v4 = vmul.f32 %v176_v54, %v517_v18 }
  0x3c   :  { %v381_v62 = vpop.eup %380  ;;  %v141_v3 = vor.u32 1.1754944e-38, %v140_v53  ;;  %v197_v5 = vand.u32 2147483647, %v580_v29  ;;  %v199_v8 = vand.u32 2147483648, %v580_v29  ;;  %v606_v15 = vmin.f32 %v301_v52, 16.0 }
  0x3d   :  { %v383_v1 = vpop.eup %382  ;;  %v90_v2 = vmul.f32 %v381_v62, %v88_v40  ;;  %vm95_vm4 = vweird.f32 %v381_v62  ;;  %v226_v9 = vmul.f32 %v225_v12, %v536_v30  ;;  %v264_v11 = vadd.f32 0.00028619796, %v263_v13 }
  0x3e   :  { %v130_v6 = vmul.f32 %v383_v1, %v128_v42  ;;  %v275_v14 = vadd.f32 0.001143296, %v274_v0  ;;  %vm135_vm5 = vweird.f32 %v383_v1  ;;  %v215_v17 = vmul.f32 %v214_v61, %v536_v30  ;;  %vm614_vm6 = vmor %vm94_vm0, %vm95_vm4 }
  0x3f   :  { %v91_v10 = vsub.f32 1.0, %v90_v2  ;;  %v227_v22 = vadd.f32 1.0, %v226_v9  ;;  %v265_v24 = vmul.f32 %v264_v11, %v587_v58  ;;  %v303_v26 = vmul.f32 2.1237322e-06, %v606_v15  ;;  %vm621_vm8 = vmor %vm134_vm2, %vm135_vm5 }
  0x40   :  { %v131_v16 = vsub.f32 1.0, %v130_v6  ;;  %v385_v18 = vpop.eup %384  ;;  %v276_v25 = vmul.f32 %v275_v14, %v587_v58  ;;  %vm193_vm7 = vweird.f32 %v580_v29  ;;  %vm629_vm11 = vcmp.eq.f32.partialorder %v197_v5, 8.507059e+37 }
  0x41   :  { %v92_v23 = vmul.f32 %v381_v62, %v91_v10  ;;  %v189_v31 = vmul.f32 %v385_v18, %v580_v29  ;;  %386 = vrcp.f32 %v227_v22  ;;  %vm194_vm10 = vweird.f32 %v385_v18 }
  0x42   :  { %v132_v28 = vmul.f32 %v383_v1, %v131_v16  ;;  %v200_v35 = vor.u32 1.1754944e-38, %v199_v8  ;;  %v266_v38 = vadd.f32 0.0036580483, %v265_v24  ;;  %v277_v39 = vadd.f32 0.014752088, %v276_v25  ;;  %vm645_vm13 = vmor %vm193_vm7, %vm194_vm10 }
  0x43   :  { %v93_v30 = vadd.f32 %v381_v62, %v92_v23  ;;  %v190_v37 = vsub.f32 1.0, %v189_v31  ;;  %v216_v42 = vadd.f32 1.1283791, %v215_v17  ;;  %vm233_vm12 = vweird.f32 %v227_v22 }
  0x44   :  { %v133_v36 = vadd.f32 %v383_v1, %v132_v28  ;;  %v304_v43 = vadd.f32 0.00028619796, %v303_v26  ;;  %v267_v20 = vmul.f32 %v266_v38, %v587_v58  ;;  %v237_v49 = vand.u32 2147483647, %v227_v22 }
  0x45   :  { %v97_v40 = vsel %vm614_vm6, %v381_v62, %v93_v30  ;;  %v191_v46 = vmul.f32 %v385_v18, %v190_v37  ;;  %v278_v50 = vmul.f32 %v277_v39, %v587_v58  ;;  %v239_v54 = vand.u32 2147483648, %v227_v22 }
  0x46   :  { %v102_v44 = vsel %vm589_vm1, %v101_v60, %v97_v40  ;;  %v137_v45 = vsel %vm621_vm8, %v383_v1, %v133_v36  ;;  %v305_v55 = vmul.f32 %v304_v43, %v606_v15  ;;  %v314_v61 = vmul.f32 3.8918573e-05, %v606_v15 }
  0x47   :  { %v103_v47 = vmul.f32 %v102_v44, %v78_v56  ;;  %v142_v21 = vsel %vm594_vm3, %v141_v3, %v137_v45  ;;  %v387_v51 = vpop.eup %386  ;;  %v192_v53 = vadd.f32 %v385_v18, %v191_v46  ;;  %v279_v60 = vadd.f32 0.112945676, %v278_v50 }
  0x48   :  { %v143_v52 = vmul.f32 %v142_v21, %v585_v57  ;;  %v229_v59 = vmul.f32 %v387_v51, %v227_v22  ;;  %vm234_vm14 = vweird.f32 %v387_v51  ;;  %v268_v63 = vadd.f32 0.05243302, %v267_v20 }
  0x49   :  { %v366_v56 = vclamps-f32 %v103_v47, 1.0  ;;  %v196_v62 = vsel %vm645_vm13, %v385_v18, %v192_v53  ;;  %v280_v0 = vmul.f32 %v279_v60, %v587_v58  ;;  %v217_v3 = vmul.f32 %v216_v42, %v519_v19  ;;  %vm235_vm15 = vmor %vm233_vm12, %vm234_vm14 }
  0x4a   :  { %v367_v29 = vclamps-f32 %v143_v52, 1.0  ;;  %v201_v13 = vsel %vm629_vm11, %v200_v35, %v196_v62  ;;  %v230_v57 = vsub.f32 1.0, %v229_v59  ;;  %v315_v8 = vadd.f32 0.001143296, %v314_v61 }
  0x4b   :  { %v146_v12 = vadd.f32 1.0, %v366_v56  ;;  %v202_v2 = vmul.f32 %v201_v13, %v601_v4  ;;  %v281_v6 = vadd.f32 0.4994258, %v280_v0  ;;  %vm238_vm0 = vcmp.eq.f32.partialorder %v237_v49, 8.507059e+37 }
  0x4c   :  { %v147_v1 = vadd.f32 1.0, %v367_v29  ;;  %v231_v5 = vmul.f32 %v387_v51, %v230_v57  ;;  %v240_v10 = vor.u32 1.1754944e-38, %v239_v54  ;;  %v269_v11 = vmul.f32 %v268_v63, %v587_v58 }
  0x4d   :  { %148 = vst [vmem:[#allocation9] ss:$4 sm:$0xff] %v146_v12  ;;  %v370_v9 = vclamps-f32 %v202_v2, 1.0  ;;  %v282_v4 = vmul.f32 %v281_v6, %v587_v58  ;;  %v306_v16 = vadd.f32 0.0036580483, %v305_v55  ;;  %v316_v19 = vmul.f32 %v315_v8, %v606_v15 }
  0x4e   :  { %154 = vst.msk [vmem:[#allocation9 + $0x20] ss:$4 sm:$0x1f] %vm625_vm9, %v147_v1  ;;  %v232_v14 = vadd.f32 %v387_v51, %v231_v5  ;;  %v270_v27 = vadd.f32 0.18741608, %v269_v11 }
  0x4f   :  { %v245_v17 = vadd.f32 1.0, %v370_v9  ;;  %v283_v23 = vadd.f32 1.0, %v282_v4  ;;  %v317_v24 = vadd.f32 0.014752088, %v316_v19  ;;  %v307_v22 = vmul.f32 %v306_v16, %v606_v15 }
  0x50   :  { %v236_v18 = vsel %vm235_vm15, %v387_v51, %v232_v14  ;;  %v271_v34 = vmul.f32 %v270_v27, %v587_v58 }
  0x51   :  { %248 = vst [vmem:[#allocation9 + $0x1] ss:$4 sm:$0xff] %v245_v17  ;;  %v241_v25 = vsel %vm238_vm0, %v240_v10, %v236_v18  ;;  %388 = vrcp.f32 %v283_v23  ;;  %v318_v28 = vmul.f32 %v317_v24, %v606_v15  ;;  %v308_v35 = vadd.f32 0.05243302, %v307_v22 }
  0x52   :  { %v242_v26 = vmul.f32 %v241_v25, %v217_v3  ;;  %v272_v40 = vadd.f32 1.1283791, %v271_v34  ;;  %vm289_vm1 = vweird.f32 %v283_v23  ;;  %v295_v42 = vand.u32 2147483648, %v283_v23 }
  0x53   :  { %v319_v30 = vadd.f32 0.112945676, %v318_v28  ;;  %v309_v43 = vmul.f32 %v308_v35, %v606_v15  ;;  %v293_v45 = vand.u32 2147483647, %v283_v23 }
  0x54   :  { %v371_v31 = vclamps-f32 %v242_v26, 1.0  ;;  %v273_v47 = vmul.f32 %v272_v40, %v556_v7  ;;  %v296_v21 = vor.u32 1.1754944e-38, %v295_v42 }
  0x55   :  { %v320_v36 = vmul.f32 %v319_v30, %v606_v15  ;;  %vm294_vm4 = vcmp.eq.f32.partialorder %v293_v45, 8.507059e+37  ;;  %v310_v49 = vadd.f32 0.18741608, %v309_v43 }
  0x56   :  { %v246_v32 = vadd.f32 1.0, %v371_v31 }
  0x57   :  { %v389_v37 = vpop.eup %388  ;;  %v321_v39 = vadd.f32 0.4994258, %v320_v36  ;;  %v311_v53 = vmul.f32 %v310_v49, %v606_v15 }
  0x58   :  { %250 = vst.msk [vmem:[#allocation9 + $0x21] ss:$4 sm:$0x1f] %vm625_vm9, %v246_v32  ;;  %v285_v38 = vmul.f32 %v389_v37, %v283_v23  ;;  %vm290_vm2 = vweird.f32 %v389_v37 }
  0x59   :  { %v322_v46 = vmul.f32 %v321_v39, %v606_v15  ;;  %vm291_vm3 = vmor %vm289_vm1, %vm290_vm2  ;;  %v312_v60 = vadd.f32 1.1283791, %v311_v53 }
  0x5a   :  { %v286_v44 = vsub.f32 1.0, %v285_v38 }
  0x5b   :  { %v323_v20 = vadd.f32 1.0, %v322_v46  ;;  %v313_v12 = vmul.f32 %v312_v60, %v571_v41 }
  0x5c   :  { %v287_v58 = vmul.f32 %v389_v37, %v286_v44 }
  0x5d   :  { %390 = vrcp.f32 %v323_v20  ;;  %v335_v61 = vand.u32 2147483648, %v323_v20  ;;  %vm329_vm5 = vweird.f32 %v323_v20  ;;  %v333_v7 = vand.u32 2147483647, %v323_v20 }
  0x5e   :  { %v288_v48 = vadd.f32 %v389_v37, %v287_v58 }
  0x5f   :  { %v336_v63 = vor.u32 1.1754944e-38, %v335_v61  ;;  %vm334_vm8 = vcmp.eq.f32.partialorder %v333_v7, 8.507059e+37 }
  0x60   :  { %v292_v50 = vsel %vm291_vm3, %v389_v37, %v288_v48 }
  0x61   :  { %v297_v51 = vsel %vm294_vm4, %v296_v21, %v292_v50 }
  0x62   :  { %v298_v52 = vmul.f32 %v297_v51, %v273_v47 }
  0x63   :  { %v391_v54 = vpop.eup %390 }
  0x64   :  { %v374_v55 = vclamps-f32 %v298_v52, 1.0  ;;  %v325_v56 = vmul.f32 %v391_v54, %v323_v20  ;;  %vm330_vm6 = vweird.f32 %v391_v54 }
  0x65   :  { %vm331_vm7 = vmor %vm329_vm5, %vm330_vm6 }
  0x66   :  { %v341_v59 = vadd.f32 1.0, %v374_v55  ;;  %v326_v29 = vsub.f32 1.0, %v325_v56 }
  0x68   :  { %344 = vst [vmem:[#allocation9 + $0x2] ss:$4 sm:$0xff] %v341_v59  ;;  %v327_v62 = vmul.f32 %v391_v54, %v326_v29 }
  0x6a   :  { %v328_v13 = vadd.f32 %v391_v54, %v327_v62 }
  0x6c   :  { %v332_v57 = vsel %vm331_vm7, %v391_v54, %v328_v13 }
  0x6d   :  { %v337_v15 = vsel %vm334_vm8, %v336_v63, %v332_v57 }
  0x6e   :  { %v338_v0 = vmul.f32 %v337_v15, %v313_v12 }
  0x70   :  { %v375_v1 = vclamps-f32 %v338_v0, 1.0 }
  0x72   :  { %v342_v2 = vadd.f32 1.0, %v375_v1 }
  0x74   :  { %346 = vst.msk [vmem:[#allocation9 + $0x22] ss:$4 sm:$0x1f] %vm625_vm9, %v342_v2 }
  0x75   :  { %357 = dma.vmem_to_hbm [thread:$0]  %s353_s29, 832, %s355_s5, [#allocation4]  }
  0x76   :  { %470 = dma.done.wait [#allocation4], 832  }
  0x77   :  { %471 = vsyncadd [#allocation4], 4294966464 }
  0x78   :  { %362 = vsyncpa [#allocation3], 1 }
  0x79   :  { %363 = vsyncpa [#allocation4], 1 }
  0x7a   :  { %364 = vsyncpa [#allocation5], 1 }
  0x7b   :  { %365 = vsyncpa [#allocation6], 1 }

</bundles_post_ra>
